<compile_context>
chip_gen: v7x
topology: tpu7x:2x2x1
jax: 0.10.0
libtpu: 0.0.40
codegen_flags: <defaults>
</compile_context>

<pallas_src>
import numpy as np
import jax
import jax.numpy as jnp
from jax.experimental import pallas as pl
from jax.experimental.pallas import tpu as pltpu


def _round_up(n, m):
    return (n + m - 1) // m * m


def _rows_per_batch(cin_p, cout_p, ksize, has_proj):
    """Rough count of live f32 rows (length L) per batch element per grid step."""
    return (4 * cin_p + 4 * cout_p                       # in/out blocks, 2x buffered
            + (ksize + 2) * (cin_p + cout_p)             # tap stacks + activations
            + 8 * cout_p + (cin_p if has_proj else 0))   # temporaries slack


def _choose_bt(B, cin_p, cout_p, length, ksize, has_proj, vmem_budget=24 << 20):
    """Batch elements per grid step: big blocks, bounded VMEM, grid >= 2."""
    per_b = _rows_per_batch(cin_p, cout_p, ksize, has_proj) * length * 4
    bt = max(1, min(B, 128, vmem_budget // max(per_b, 1)))
    if B >= 2:                    # keep >= 2 grid steps so v7x megacore can split
        bt = min(bt, B // 2)
    bt = max(bt, 1)
    while B % bt:                 # make bt a divisor of B (no ragged last block)
        bt -= 1
    return bt


def _vmem_limit_bytes(bt, cin_p, cout_p, length, ksize, has_proj):
    need = bt * _rows_per_batch(cin_p, cout_p, ksize, has_proj) * length * 4
    return int(min(56 << 20, max(32 << 20, 2 * need + (4 << 20))))


def make_resblock_kernel(bt, cin_p, cout_p, length, ksize, has_proj, out_act,
                         eps=1e-5):
    """Fused, batch-vectorized kernel over `bt` samples of a (C, L) tile."""
    p = ksize // 2
    offsets = list(range(-p, p + 1))          # tap j reads x[:, t + j]
    inv_l = 1.0 / float(length)

    def kernel(x_ref, w1_ref, w2_ref, b_ref, o_ref):
        w1 = w1_ref[...]            # (cout_p, K*cin_p)
        w2 = w2_ref[...]            # (cout_p, K*cout_p [+ cin_p])
        bias = b_ref[...]           # (cout_p, 2): col0 = b1, col1 = b2 (+ b_proj)

        # ---- hoisted loop-invariants (built once per grid step) --------------
        t = jax.lax.broadcasted_iota(jnp.int32, (1, length), 1)
        maskf = {j: jnp.logical_and(t + j >= 0, t + j < length).astype(jnp.float32)
                 for j in offsets if j != 0}
        ones_l = jnp.ones((length, 1), jnp.float32)          # MXU row-sum vector
        w1b = jnp.broadcast_to(w1[None], (bt,) + w1.shape)    # batch-broadcast w
        w2b = jnp.broadcast_to(w2[None], (bt,) + w2.shape)
        b1r = jnp.broadcast_to(bias[:, 0:1][None], (bt, cout_p, 1)
                               ).reshape(bt * cout_p, 1)      # per-row biases
        b2r = jnp.broadcast_to(bias[:, 1:2][None], (bt, cout_p, 1)
                               ).reshape(bt * cout_p, 1)

        def taps3(a2, c):
            # a_j[:, t] = a[:, t+j], zero outside [0, L): roll (XLU) + f32 mask
            # multiply (VPU); pieces returned as (bt, c, L) for the batched dot.
            pieces = []
            for j in offsets:
                if j == 0:
                    r = a2
                else:
                    r = pltpu.roll(a2, (-j) % length, axis=1) * maskf[j]
                pieces.append(r.reshape(bt, c, length))
            return pieces

        def inorm(a2):
            # InstanceNorm1d (affine=False, eps=1e-5): row sums via tiny MXU
            # matmuls (MXU is otherwise idle; frees the XLU for the rolls),
            # mean/var on the VPU, rsqrt on the EUP.
            s1 = jnp.dot(a2, ones_l, preferred_element_type=jnp.float32)
            s2 = jnp.dot(a2 * a2, ones_l, preferred_element_type=jnp.float32)
            mean = s1 * inv_l
            var = s2 * inv_l - mean * mean
            return (a2 - mean) * jax.lax.rsqrt(var + eps)

        x3 = x_ref[...]                                    # (bt, cin_p, L)
        x2 = x3.reshape(bt * cin_p, length)                # free view (cin_p % 8 == 0)

        # conv1: all K taps of all bt samples in one batched MXU matmul
        xs = jnp.concatenate(taps3(x2, cin_p), axis=1)     # (bt, K*cin_p, L)
        y = jnp.einsum("bok,bkl->bol", w1b, xs,
                       preferred_element_type=jnp.float32)
        y2 = y.reshape(bt * cout_p, length) + b1r
        y2 = jnp.maximum(inorm(y2), 0.0)

        # conv2 (+ fused 1x1 projection) + residual + InstanceNorm (+ ReLU)
        # NOTE (v5e): the concat copies could be traded for K accumulating
        # matmuls if the single vector-store slot ever binds there.
        pieces = taps3(y2, cout_p)
        if has_proj:
            pieces = pieces + [x3]
        ys = jnp.concatenate(pieces, axis=1)               # (bt, K*cout_p[+cin_p], L)
        z = jnp.einsum("bok,bkl->bol", w2b, ys,
                       preferred_element_type=jnp.float32)
        z2 = z.reshape(bt * cout_p, length) + b2r
        if not has_proj:
            z2 = z2 + x2                                   # identity residual
        z2 = inorm(z2)
        if out_act:
            z2 = jnp.maximum(z2, 0.0)
        o_ref[...] = z2.reshape(bt, cout_p, length)

    return kernel


def _stack_weight(w, in_p, out_p):
    """ConvTranspose1d weight (C_in, C_out, K) -> fused slab (out_p, K*in_p).

    Column block m is the tap for offset j = m - K//2 and equals W[ic, o, K-1-m]
    (in/out transposed + kernel flipped), zero-padded to sublane-aligned channels.
    """
    in_c, out_c, k = w.shape
    wt = jnp.transpose(w, (1, 0, 2))[:, :, ::-1]       # (out_c, in_c, K)
    wt = jnp.pad(wt, ((0, out_p - out_c), (0, in_p - in_c), (0, 0)))
    return jnp.transpose(wt, (0, 2, 1)).reshape(out_p, k * in_p)


def resblock_transpose(x, params, kernel_size, padding, has_proj, out_act=True,
                       bt=None):
    """Pallas forward of ResBlockTranspose (stride=1, length-preserving)."""
    B, c_in, L = x.shape
    c_out = params["b1"].shape[0]
    k = kernel_size
    assert k % 2 == 1 and padding == (k - 1) // 2, (
        "residual requires a length-preserving ConvTranspose1d "
        "(stride=1, odd kernel, padding=(K-1)//2)")
    # TODO(synk): stride>1 / output_padding ConvTranspose1d (upsampling) not
    # implemented; the module's residual add only type-checks for stride=1.
    # NOTE: the full length L must stay in one block (pltpu.roll wraps modulo L
    # and InstanceNorm reduces over the whole L axis); only the batch is tiled.

    cin_p = _round_up(c_in, 8)    # sublane-align channels -> tile-aligned concats
    cout_p = _round_up(c_out, 8)
    if bt is None:
        bt = _choose_bt(B, cin_p, cout_p, L, k, has_proj)
    assert B % bt == 0, f"bt={bt} must divide batch {B}"

    # Pad / slice only when channels are not 8-aligned; callers chaining blocks
    # can keep the padded layout end-to-end and skip both extra HBM passes.
    x_p = x if cin_p == c_in else jnp.pad(x, ((0, 0), (0, cin_p - c_in), (0, 0)))
    w1 = _stack_weight(params["w1"], cin_p, cout_p)                # (cout_p, K*cin_p)
    w2 = _stack_weight(params["w2"], cout_p, cout_p)               # (cout_p, K*cout_p)
    b1 = jnp.pad(params["b1"], (0, cout_p - c_out))
    b2 = jnp.pad(params["b2"], (0, cout_p - c_out))
    if has_proj:
        wp = jnp.pad(jnp.transpose(params["wp"][:, :, 0]),         # (c_out, c_in)
                     ((0, cout_p - c_out), (0, cin_p - c_in)))
        w2 = jnp.concatenate([w2, wp], axis=1)                     # fuse 1x1 proj
        b2 = b2 + jnp.pad(params["bp"], (0, cout_p - c_out))
    bias = jnp.stack([b1, b2], axis=1)                             # (cout_p, 2)

    kernel = make_resblock_kernel(bt, cin_p, cout_p, L, k, has_proj, out_act)

    out = pl.pallas_call(
        kernel,
        out_shape=jax.ShapeDtypeStruct((B, cout_p, L), jnp.float32),
        grid_spec=pltpu.PrefetchScalarGridSpec(
            num_scalar_prefetch=0,
            grid=(B // bt,),
            in_specs=[
                pl.BlockSpec((bt, cin_p, L), lambda b: (b, 0, 0)),
                pl.BlockSpec(w1.shape, lambda b: (0, 0)),
                pl.BlockSpec(w2.shape, lambda b: (0, 0)),
                pl.BlockSpec(bias.shape, lambda b: (0, 0)),
            ],
            out_specs=pl.BlockSpec((bt, cout_p, L), lambda b: (b, 0, 0)),
        ),
        compiler_params=pltpu.CompilerParams(
            dimension_semantics=("parallel",),
            vmem_limit_bytes=_vmem_limit_bytes(bt, cin_p, cout_p, L, k, has_proj)),
    )(x_p, w1, w2, bias)
    return out if cout_p == c_out else out[:, :c_out, :]


def init_params(key, c_in, c_out, ksize):
    """Deterministic ConvTranspose1d-style init (uniform +-1/sqrt(fan_in))."""
    has_proj = c_in != c_out
    ks = jax.random.split(key, 6)

    def u(k, shape, fan_in):
        bound = 1.0 / np.sqrt(fan_in)
        return jax.random.uniform(k, shape, jnp.float32, -bound, bound)

    params = {
        "w1": u(ks[0], (c_in, c_out, ksize), c_out * ksize),
        "b1": u(ks[1], (c_out,), c_out * ksize),
        "w2": u(ks[2], (c_out, c_out, ksize), c_out * ksize),
        "b2": u(ks[3], (c_out,), c_out * ksize),
    }
    if has_proj:
        params["wp"] = u(ks[4], (c_in, c_out, 1), c_out)
        params["bp"] = u(ks[5], (c_out,), c_out)
    return params, has_proj


def _conv_transpose1d_ref(x, w, b, padding):
    # PyTorch ConvTranspose1d (stride=1) == cross-correlation with the
    # in/out-transposed, kernel-flipped weight and padding K-1-p.
    k = w.shape[2]
    wf = jnp.transpose(w, (1, 0, 2))[:, :, ::-1]
    q = k - 1 - padding
    y = jax.lax.conv_general_dilated(
        x, wf, window_strides=(1,), padding=[(q, q)],
        dimension_numbers=("NCH", "OIH", "NCH"))
    return y + b[None, :, None]


def _instance_norm_ref(y, eps=1e-5):
    mean = jnp.mean(y, axis=-1, keepdims=True)
    var = jnp.mean((y - mean) ** 2, axis=-1, keepdims=True)
    return (y - mean) * jax.lax.rsqrt(var + eps)


def ref_forward(x, params, kernel_size, padding, has_proj, out_act=True):
    """Pure-JAX reference mirroring ResBlockTranspose.forward."""
    y = _conv_transpose1d_ref(x, params["w1"], params["b1"], padding)
    y = jnp.maximum(_instance_norm_ref(y), 0.0)
    y = _conv_transpose1d_ref(y, params["w2"], params["b2"], padding)
    y0 = x
    if has_proj:
        y0 = _conv_transpose1d_ref(x, params["wp"], params["bp"], 0)
    y = _instance_norm_ref(y + y0)
    if out_act:
        y = jnp.maximum(y, 0.0)
    return y


if __name__ == "__main__":
    # ConvTranspose1d(4 -> 8, kernel_size=3, stride=1, padding=1); L=128 keeps the
    # output store lane-dense.  bt is auto-chosen (here bt=1 -> grid=(2,), which
    # keeps both v7x TensorCores busy; big batches get large blocks automatically).
    B, C_IN, C_OUT, L = 2, 4, 8, 128
    KSIZE, STRIDE, PAD = 3, 1, 1
    assert STRIDE == 1

    key = jax.random.PRNGKey(0)
    kx, kp = jax.random.split(key)
    x = jax.random.normal(kx, (B, C_IN, L), dtype=jnp.float32)
    params, has_proj = init_params(kp, C_IN, C_OUT, KSIZE)

    out = resblock_transpose(x, params, KSIZE, PAD, has_proj, out_act=True)
    out = jax.block_until_ready(out)

    ref = ref_forward(x, params, KSIZE, PAD, has_proj, out_act=True)
    assert out.shape == (B, C_OUT, L)
    np.testing.assert_allclose(np.asarray(out), np.asarray(ref),
                               atol=1e-3, rtol=1e-3)
    print("KERNEL_OK")
</pallas_src>

<mosaic_0001>
module attributes {stable_mosaic.version = 11 : i64} {
  func.func @kernel(%arg0: i32, %arg1: memref<1x8x128xf32, #tpu.memory_space<vmem>>, %arg2: memref<8x24xf32, #tpu.memory_space<vmem>>, %arg3: memref<8x32xf32, #tpu.memory_space<vmem>>, %arg4: memref<8x2xf32, #tpu.memory_space<vmem>>, %arg5: memref<1x8x128xf32, #tpu.memory_space<vmem>>) attributes {dimension_semantics = [#tpu.dimension_semantics<parallel>], iteration_bounds = array<i64: 2>, scalar_prefetch = 0 : i64, scratch_operands = 0 : i64, tpu.core_type = #tpu.core_type<tc>, window_params = [{transform_indices = @transform_0, window_bounds = array<i64: 1, 8, 128>}, {pipeline_mode = #tpu.pipeline_mode<synchronous>, transform_indices = @transform_1, window_bounds = array<i64: 8, 24>}, {pipeline_mode = #tpu.pipeline_mode<synchronous>, transform_indices = @transform_2, window_bounds = array<i64: 8, 32>}, {pipeline_mode = #tpu.pipeline_mode<synchronous>, transform_indices = @transform_3, window_bounds = array<i64: 8, 2>}, {transform_indices = @transform_4, window_bounds = array<i64: 1, 8, 128>}]} {
    %c0 = arith.constant 0 : index
    %c0_0 = arith.constant 0 : index
    %0 = vector.load %arg2[%c0, %c0_0] : memref<8x24xf32, #tpu.memory_space<vmem>>, vector<8x24xf32>
    %c0_1 = arith.constant 0 : index
    %c0_2 = arith.constant 0 : index
    %1 = vector.load %arg3[%c0_1, %c0_2] : memref<8x32xf32, #tpu.memory_space<vmem>>, vector<8x32xf32>
    %c0_3 = arith.constant 0 : index
    %c0_4 = arith.constant 0 : index
    %2 = vector.load %arg4[%c0_3, %c0_4] : memref<8x2xf32, #tpu.memory_space<vmem>>, vector<8x2xf32>
    %3 = tpu.iota {dimensions = array<i32: 1>} : vector<1x128xi32>
    %c-1_i32 = arith.constant -1 : i32
    %4 = vector.broadcast %c-1_i32 : i32 to vector<1x128xi32>
    %5 = arith.addi %3, %4 : vector<1x128xi32>
    %c0_i32 = arith.constant 0 : i32
    %6 = vector.broadcast %c0_i32 : i32 to vector<1x128xi32>
    %7 = arith.cmpi sge, %5, %6 : vector<1x128xi32>
    %c-1_i32_5 = arith.constant -1 : i32
    %8 = vector.broadcast %c-1_i32_5 : i32 to vector<1x128xi32>
    %9 = arith.addi %3, %8 : vector<1x128xi32>
    %c128_i32 = arith.constant 128 : i32
    %10 = vector.broadcast %c128_i32 : i32 to vector<1x128xi32>
    %11 = arith.cmpi slt, %9, %10 : vector<1x128xi32>
    %12 = arith.andi %7, %11 : vector<1x128xi1>
    %13 = arith.extui %12 : vector<1x128xi1> to vector<1x128xi32>
    %14 = arith.sitofp %13 : vector<1x128xi32> to vector<1x128xf32>
    %c1_i32 = arith.constant 1 : i32
    %15 = vector.broadcast %c1_i32 : i32 to vector<1x128xi32>
    %16 = arith.addi %3, %15 : vector<1x128xi32>
    %c0_i32_6 = arith.constant 0 : i32
    %17 = vector.broadcast %c0_i32_6 : i32 to vector<1x128xi32>
    %18 = arith.cmpi sge, %16, %17 : vector<1x128xi32>
    %c1_i32_7 = arith.constant 1 : i32
    %19 = vector.broadcast %c1_i32_7 : i32 to vector<1x128xi32>
    %20 = arith.addi %3, %19 : vector<1x128xi32>
    %c128_i32_8 = arith.constant 128 : i32
    %21 = vector.broadcast %c128_i32_8 : i32 to vector<1x128xi32>
    %22 = arith.cmpi slt, %20, %21 : vector<1x128xi32>
    %23 = arith.andi %18, %22 : vector<1x128xi1>
    %24 = arith.extui %23 : vector<1x128xi1> to vector<1x128xi32>
    %25 = arith.sitofp %24 : vector<1x128xi32> to vector<1x128xf32>
    %cst = arith.constant 1.000000e+00 : f32
    %26 = vector.broadcast %cst : f32 to vector<128x1xf32>
    %27 = vector.shape_cast %0 : vector<8x24xf32> to vector<1x8x24xf32>
    %28 = vector.shape_cast %1 : vector<8x32xf32> to vector<1x8x32xf32>
    %29 = vector.extract_strided_slice %2 {offsets = [0, 0], sizes = [8, 1], strides = [1, 1]} : vector<8x2xf32> to vector<8x1xf32>
    %30 = vector.shape_cast %29 : vector<8x1xf32> to vector<1x8x1xf32>
    %31 = vector.shape_cast %30 : vector<1x8x1xf32> to vector<8x1xf32>
    %32 = vector.extract_strided_slice %2 {offsets = [0, 1], sizes = [8, 1], strides = [1, 1]} : vector<8x2xf32> to vector<8x1xf32>
    %33 = vector.shape_cast %32 : vector<8x1xf32> to vector<1x8x1xf32>
    %34 = vector.shape_cast %33 : vector<1x8x1xf32> to vector<8x1xf32>
    %c0_9 = arith.constant 0 : index
    %c0_10 = arith.constant 0 : index
    %c0_11 = arith.constant 0 : index
    %35 = vector.load %arg1[%c0_9, %c0_10, %c0_11] : memref<1x8x128xf32, #tpu.memory_space<vmem>>, vector<1x8x128xf32>
    %36 = vector.shape_cast %35 : vector<1x8x128xf32> to vector<8x128xf32>
    %c1_i32_12 = arith.constant 1 : i32
    %37 = tpu.dynamic_rotate %36 by %c1_i32_12 dim 1 : vector<8x128xf32>, i32 -> vector<8x128xf32>
    %38 = vector.broadcast %14 : vector<1x128xf32> to vector<8x128xf32>
    %39 = arith.mulf %37, %38 : vector<8x128xf32>
    %40 = vector.shape_cast %39 : vector<8x128xf32> to vector<1x8x128xf32>
    %41 = vector.shape_cast %36 : vector<8x128xf32> to vector<1x8x128xf32>
    %c127_i32 = arith.constant 127 : i32
    %42 = tpu.dynamic_rotate %36 by %c127_i32 dim 1 : vector<8x128xf32>, i32 -> vector<8x128xf32>
    %43 = vector.broadcast %25 : vector<1x128xf32> to vector<8x128xf32>
    %44 = arith.mulf %42, %43 : vector<8x128xf32>
    %45 = vector.shape_cast %44 : vector<8x128xf32> to vector<1x8x128xf32>
    %46 = tpu.concatenate %40, %41, %45 in 1 : vector<1x8x128xf32>, vector<1x8x128xf32>, vector<1x8x128xf32> -> vector<1x24x128xf32>
    "tpu.trace_start"() <{level = 10 : i32, message = "bok,bkl->bol"}> : () -> ()
    %cst_13 = arith.constant dense<0.000000e+00> : vector<1x8x128xf32>
    %47 = tpu.matmul %27, %46, %cst_13 {dimension_numbers = #tpu.dot_dimension_numbers<[2], [1], [1], [2], [0, 0, 0, 1, 1, 2], [0], [0]>} : vector<1x8x24xf32>, vector<1x24x128xf32>, vector<1x8x128xf32> -> vector<1x8x128xf32>
    "tpu.trace_stop"() : () -> ()
    %48 = vector.shape_cast %47 : vector<1x8x128xf32> to vector<8x128xf32>
    %49 = vector.broadcast %31 : vector<8x1xf32> to vector<8x128xf32>
    %50 = arith.addf %48, %49 : vector<8x128xf32>
    %cst_14 = arith.constant dense<0.000000e+00> : vector<8x1xf32>
    %51 = tpu.matmul %50, %26, %cst_14 {dimension_numbers = #tpu.dot_dimension_numbers<[1], [0], [0], [1], [0, 0, 1, 1], [], []>} : vector<8x128xf32>, vector<128x1xf32>, vector<8x1xf32> -> vector<8x1xf32>
    %52 = arith.mulf %50, %50 : vector<8x128xf32>
    %cst_15 = arith.constant dense<0.000000e+00> : vector<8x1xf32>
    %53 = tpu.matmul %52, %26, %cst_15 {dimension_numbers = #tpu.dot_dimension_numbers<[1], [0], [0], [1], [0, 0, 1, 1], [], []>} : vector<8x128xf32>, vector<128x1xf32>, vector<8x1xf32> -> vector<8x1xf32>
    %cst_16 = arith.constant 7.812500e-03 : f32
    %54 = vector.broadcast %cst_16 : f32 to vector<8x1xf32>
    %55 = arith.mulf %51, %54 : vector<8x1xf32>
    %cst_17 = arith.constant 7.812500e-03 : f32
    %56 = vector.broadcast %cst_17 : f32 to vector<8x1xf32>
    %57 = arith.mulf %53, %56 : vector<8x1xf32>
    %58 = arith.mulf %55, %55 : vector<8x1xf32>
    %59 = arith.subf %57, %58 : vector<8x1xf32>
    %60 = vector.broadcast %55 : vector<8x1xf32> to vector<8x128xf32>
    %61 = arith.subf %50, %60 : vector<8x128xf32>
    %cst_18 = arith.constant 9.99999974E-6 : f32
    %62 = vector.broadcast %cst_18 : f32 to vector<8x1xf32>
    %63 = arith.addf %59, %62 : vector<8x1xf32>
    %64 = math.rsqrt %63 : vector<8x1xf32>
    %65 = vector.broadcast %64 : vector<8x1xf32> to vector<8x128xf32>
    %66 = arith.mulf %61, %65 : vector<8x128xf32>
    %cst_19 = arith.constant 0.000000e+00 : f32
    %67 = vector.broadcast %cst_19 : f32 to vector<8x128xf32>
    %68 = arith.maximumf %66, %67 : vector<8x128xf32>
    %c1_i32_20 = arith.constant 1 : i32
    %69 = tpu.dynamic_rotate %68 by %c1_i32_20 dim 1 : vector<8x128xf32>, i32 -> vector<8x128xf32>
    %70 = vector.broadcast %14 : vector<1x128xf32> to vector<8x128xf32>
    %71 = arith.mulf %69, %70 : vector<8x128xf32>
    %72 = vector.shape_cast %71 : vector<8x128xf32> to vector<1x8x128xf32>
    %73 = vector.shape_cast %68 : vector<8x128xf32> to vector<1x8x128xf32>
    %c127_i32_21 = arith.constant 127 : i32
    %74 = tpu.dynamic_rotate %68 by %c127_i32_21 dim 1 : vector<8x128xf32>, i32 -> vector<8x128xf32>
    %75 = vector.broadcast %25 : vector<1x128xf32> to vector<8x128xf32>
    %76 = arith.mulf %74, %75 : vector<8x128xf32>
    %77 = vector.shape_cast %76 : vector<8x128xf32> to vector<1x8x128xf32>
    %78 = tpu.concatenate %72, %73, %77, %35 in 1 : vector<1x8x128xf32>, vector<1x8x128xf32>, vector<1x8x128xf32>, vector<1x8x128xf32> -> vector<1x32x128xf32>
    "tpu.trace_start"() <{level = 10 : i32, message = "bok,bkl->bol"}> : () -> ()
    %cst_22 = arith.constant dense<0.000000e+00> : vector<1x8x128xf32>
    %79 = tpu.matmul %28, %78, %cst_22 {dimension_numbers = #tpu.dot_dimension_numbers<[2], [1], [1], [2], [0, 0, 0, 1, 1, 2], [0], [0]>} : vector<1x8x32xf32>, vector<1x32x128xf32>, vector<1x8x128xf32> -> vector<1x8x128xf32>
    "tpu.trace_stop"() : () -> ()
    %80 = vector.shape_cast %79 : vector<1x8x128xf32> to vector<8x128xf32>
    %81 = vector.broadcast %34 : vector<8x1xf32> to vector<8x128xf32>
    %82 = arith.addf %80, %81 : vector<8x128xf32>
    %cst_23 = arith.constant dense<0.000000e+00> : vector<8x1xf32>
    %83 = tpu.matmul %82, %26, %cst_23 {dimension_numbers = #tpu.dot_dimension_numbers<[1], [0], [0], [1], [0, 0, 1, 1], [], []>} : vector<8x128xf32>, vector<128x1xf32>, vector<8x1xf32> -> vector<8x1xf32>
    %84 = arith.mulf %82, %82 : vector<8x128xf32>
    %cst_24 = arith.constant dense<0.000000e+00> : vector<8x1xf32>
    %85 = tpu.matmul %84, %26, %cst_24 {dimension_numbers = #tpu.dot_dimension_numbers<[1], [0], [0], [1], [0, 0, 1, 1], [], []>} : vector<8x128xf32>, vector<128x1xf32>, vector<8x1xf32> -> vector<8x1xf32>
    %cst_25 = arith.constant 7.812500e-03 : f32
    %86 = vector.broadcast %cst_25 : f32 to vector<8x1xf32>
    %87 = arith.mulf %83, %86 : vector<8x1xf32>
    %cst_26 = arith.constant 7.812500e-03 : f32
    %88 = vector.broadcast %cst_26 : f32 to vector<8x1xf32>
    %89 = arith.mulf %85, %88 : vector<8x1xf32>
    %90 = arith.mulf %87, %87 : vector<8x1xf32>
    %91 = arith.subf %89, %90 : vector<8x1xf32>
    %92 = vector.broadcast %87 : vector<8x1xf32> to vector<8x128xf32>
    %93 = arith.subf %82, %92 : vector<8x128xf32>
    %cst_27 = arith.constant 9.99999974E-6 : f32
    %94 = vector.broadcast %cst_27 : f32 to vector<8x1xf32>
    %95 = arith.addf %91, %94 : vector<8x1xf32>
    %96 = math.rsqrt %95 : vector<8x1xf32>
    %97 = vector.broadcast %96 : vector<8x1xf32> to vector<8x128xf32>
    %98 = arith.mulf %93, %97 : vector<8x128xf32>
    %cst_28 = arith.constant 0.000000e+00 : f32
    %99 = vector.broadcast %cst_28 : f32 to vector<8x128xf32>
    %100 = arith.maximumf %98, %99 : vector<8x128xf32>
    %101 = vector.shape_cast %100 : vector<8x128xf32> to vector<1x8x128xf32>
    %c0_29 = arith.constant 0 : index
    %c0_30 = arith.constant 0 : index
    %c0_31 = arith.constant 0 : index
    %102 = vector.load %arg5[%c0_29, %c0_30, %c0_31] : memref<1x8x128xf32, #tpu.memory_space<vmem>>, vector<1x8x128xf32>
    tpu.vector_store %arg5[%c0_29, %c0_30, %c0_31], %101 {strides = array<i32>} : memref<1x8x128xf32, #tpu.memory_space<vmem>>, vector<1x8x128xf32>,
    return
  }
  func.func @transform_0(%arg0: i32) -> (i32, i32, i32) {
    %c0_i32 = arith.constant 0 : i32
    %c0_i32_0 = arith.constant 0 : i32
    %c0_i32_1 = arith.constant 0 : i32
    return %arg0, %c0_i32, %c0_i32_0 : i32, i32, i32
  }
  func.func @transform_1(%arg0: i32) -> (i32, i32) {
    %c0_i32 = arith.constant 0 : i32
    %c0_i32_0 = arith.constant 0 : i32
    %c0_i32_1 = arith.constant 0 : i32
    return %c0_i32, %c0_i32_0 : i32, i32
  }
  func.func @transform_2(%arg0: i32) -> (i32, i32) {
    %c0_i32 = arith.constant 0 : i32
    %c0_i32_0 = arith.constant 0 : i32
    %c0_i32_1 = arith.constant 0 : i32
    return %c0_i32, %c0_i32_0 : i32, i32
  }
  func.func @transform_3(%arg0: i32) -> (i32, i32) {
    %c0_i32 = arith.constant 0 : i32
    %c0_i32_0 = arith.constant 0 : i32
    %c0_i32_1 = arith.constant 0 : i32
    return %c0_i32, %c0_i32_0 : i32, i32
  }
  func.func @transform_4(%arg0: i32) -> (i32, i32, i32) {
    %c0_i32 = arith.constant 0 : i32
    %c0_i32_0 = arith.constant 0 : i32
    %c0_i32_1 = arith.constant 0 : i32
    return %arg0, %c0_i32, %c0_i32_0 : i32, i32, i32
  }
}

</mosaic_0001>

<bundles_post_ra>
// kernel: tpu_custom_call.1
= control target key start
LH: loop header
LB: loop body
LE: loop exit
PB: predicated region body
PF: predicated region fallthrough
CT: control target
= control target key end

     0   :  { %9 = vsyncpa [#allocation3], 0  ;;  %s1607_s0 = inlined_call_operand.hbm [shape: f32[2,8,128], index: 0, kind: input, shape index: {}]   ;;  %s1608_s1 = inlined_call_operand.vmem [shape: f32[8,24], index: 1, kind: input, shape index: {}]   ;;  %s1609_s2 = inlined_call_operand.vmem [shape: f32[8,32], index: 2, kind: input, shape index: {}]   ;;  %s1610_s3 = inlined_call_operand.vmem [shape: f32[8,2], index: 3, kind: input, shape index: {}]   ;;  %s1611_s4 = inlined_call_operand.hbm [shape: f32[2,8,128], index: 4, kind: output, shape index: {}]  }
   0x1   :  { %11 = vsyncpa [#allocation3 + $0x1], 0 }
   0x2   :  { %12 = vsyncpa [#allocation4], 0 }
   0x3   :  { %14 = vsyncpa [#allocation4 + $0x1], 0  ;;  %s1326_s15 = smov 0   ;;  %s1328_s16 = smov 0  }
   0x4   :  { %s1330_s17 = smov 0   ;;  %s1332_s18 = smov 0  }
   0x5 LB: > { %s1347_s19 = sadd.s32 4294967295, %s1289_s18   ;;  %s805_s20 = sadd.s32 4294967294, %s1289_s18   ;;  %s1289_s18 = sphi %s1332_s18, %s1626_s18   ;;  %s1285_s17 = sphi %s1330_s17, %s1625_s17   ;;  %s1281_s16 = sphi %s1328_s16, %s1624_s16   ;;  %s1277_s15 = sphi %s1326_s15, %s1623_s15  }
   0x6   : > { %s1351_s21 = sadd.s32 1, %s1289_s18   ;;  %s27_s22 = sadd.s32 1, %s1285_s17 }
   0x7   : > { %s24_s23 = ssub.s32 %s1289_s18, %s1351_s21  ;;  %p34_p0 = scmp.ne.s32.totalorder %s1285_s17, %s1281_s16 }
   0x8   : > { %p25_p1 = scmp.eq.s32.totalorder %s24_s23, 0  ;;  %p35_p2 = scmp.eq.s32.totalorder %s1289_s18, 0 }
   0x9   : > { %p40_p3 = scmp.ne.s32.totalorder %s1281_s16, %s1277_s15  ;;  %p41_p4 = scmp.eq.s32.totalorder %s1347_s19, 0 }
   0xa   : > { %s1363_s24 = scalar_select %p25_p1, %s1285_s17, %s27_s22  }
   0xb   : > { %p1365_p5 = por %p35_p2, %p34_p0  ;;  %p1369_p6 = por %p41_p4, %p40_p3 }
   0xc   : > { %p127_p7 = scmp.eq.s32.totalorder %s1347_s19, 1  ;;  %p133_p8 = scmp.eq.s32.totalorder %s805_s20, 1 }
   0xd   : > { %p1143_p10 = scmp.lt.s32.totalorder %s1289_s18, 2  ;;  %s162_s29 = sand.u32 1, %s1285_s17  }
   0xe   : > { %p1376_p11 = por %p127_p7, %p34_p0  ;;  %p1380_p12 = por %p133_p8, %p40_p3 }
   0xf   : > { %s809_s30 = sshll.u32 %s1289_s18, 7  ;;  %s808_s5 = sshll.u32 %s162_s29, 3 }
  0x10   : > { %s1615_s27 = scalar_select %p1376_p11, 1, 0 }
  0x11   : > { %s1616_s28 = scalar_select %p1380_p12, 1, 0 }
  0x12   : > { %s1389_s8 = scalar_lea.hbm %s1607_s0, %s809_s30  ;;  %s166_s9 = scalar_lea.vmem [#allocation2], %s808_s5 }
  0x13   : > { %s173_s10 = sshll.u32 %s166_s9, 4  ;;  %p1393_p13 = pnand %p1143_p10, %p1365_p5  ;;  %s1397_s10 = int_to_ptr.vmem [resolvable:$true] %s173_s10 }
  0x14   : > { %s163_s12 = scalar_lea.sflag [#allocation3], %s162_s29  ;;  %s1193_s13 = scalar_lea.hbm %s1389_s8, 128 }
  0x15   : > { %p1194_p2 = scmp.ne.s32.totalorder %s1389_s8, %s1193_s13  ;;  %p1195_p3 = pneg %p1393_p13 }
  0x16   : > { %s1198_s22 = scalar_lea.hbm %s1607_s0, 256  ;;  %p1199_p5 = scmp.lt.u32.totalorder %s1389_s8, %s1607_s0 }
  0x17   : > { %p1196_p4 = pnand %p1195_p3, %p1194_p2  ;;  %p1200_p8 = scmp.lt.u32.totalorder %s1198_s22, %s1193_s13 }
  0x18   : > { %p1202_p9 = scmp.lt.u32.totalorder %s1193_s13, %s1389_s8 }
  0x19   : > { %p1197_p7 = pneg %p1196_p4  ;;  %p1201_p10 = por %p1200_p8, %p1199_p5 }
  0x1b   : > { %p1203_p0 = por %p1202_p9, %p1201_p10 }
  0x1d   : > { %p1204_p1 = pnand %p1203_p0, %p1197_p7 }
  0x1f   : > { %1207 = shalt.err (!%p1204_p1)
}
  0x20   : > { %s1208_s29 = scalar_lea.vmem %s1397_s10, 128  ;;  %s1291_s30 = smov [#allocation2]  }
  0x21   : > { %p1209_p2 = scmp.ne.s32.totalorder %s1397_s10, %s1208_s29  ;;  %s1213_s5 = sshll.u32 %s1291_s30, 4  ;;  %s1214_s5 = int_to_ptr.vmem [resolvable:$false] %s1213_s5 }
  0x22   : > { %s1215_s6 = scalar_lea.vmem %s1214_s5, 256  ;;  %p1216_p11 = scmp.lt.s32.totalorder %s1397_s10, %s1214_s5 }
  0x23   : > { %p1211_p4 = pnand %p1209_p2, %p1195_p3  ;;  %p1217_p5 = scmp.lt.s32.totalorder %s1215_s6, %s1208_s29 }
  0x25   : > { %p1212_p12 = pneg %p1211_p4  ;;  %p1218_p8 = por %p1217_p5, %p1216_p11 }
  0x27   : > { %p1219_p9 = pnand %p1218_p8, %p1212_p12 }
  0x29   : > { %1222 = shalt.err (!%p1219_p9)
}
  0x2a   : > { %1138 = dma.hbm_to_vmem [thread:$0]  (!%p1393_p13), %s1389_s8, 128, %s1397_s10, %s163_s12  }
  0x2b   : > { %p1618_p0 = scmp.lt.s32.totalorder %s1289_s18, 3  ;;  %p1619_p1 = scmp.ge.s32.totalorder %s1289_s18, 1 }
  0x2d   : > { %p179_p3 = pnand %p1619_p1, %p1618_p0 }
  0x2e   : > { %s1431_s7 = sand.u32 (!%p179_p3), 1, %s1281_s16  }
  0x2f   : > { %182 = sbr.rel (%p179_p3) target bundleno = 1478 (0x5c6), region = 36  ;;  %s811_s9 = sshll.u32 (!%p179_p3), %s1431_s7, 3 }
  0x30   : > { %s185_s13 = scalar_lea.sflag (!%p179_p3), [#allocation3], %s1431_s7  ;;  %s188_s11 = scalar_lea.vmem (!%p179_p3), [#allocation2], %s811_s9 }
  0x36   : > { %1268 = dma.done.wait (%p1369_p6), %s185_s13, 128  }
  0x37   : > { %1270 = vsyncadd (%p1369_p6), %s185_s13, 4294967168  ;;  %v1292_v0 = vmov 0.0|0.0   ;;  %vm1293_vm0 = vmmov 0   ;;  %v1294_v1 = vmov 0.0   ;;  %v1295_v2 = vmov 0   ;;  %v1451_v4 = vld [vmem:[%s188_s11] sm:$0xff] }
  0x38   : > { %1058 = vmatprep.subr.bf16.mxu0 %v1292_v0  ;;  %1061 = vmatprep.subr.bf16.mxu1 %v1292_v0  ;;  %v1296_v3 = vmov 1.0|1.0   ;;  %v1456_v5 = vld [vmem:[%s1610_s3] sm:$0xff]  ;;  %s1297_s10 = smov 1   ;;  %s1298_s12 = smov 127   ;;  %v216_v6 = vlaneseq  ;;  %vm242_vm3 = vcmask 195584  }
  0x39   : > { %904 = vmatprep.mubr.msk.f32.mxu0 %vm1293_vm0, %v1294_v1  ;;  %939 = vmatprep.mubr.msk.f32.mxu1 %vm1293_vm0, %v1294_v1  ;;  %v213_v17 = vld [vmem:[%s1608_s1] sm:$0xff]  ;;  %v1299_v38 = vmov 1   ;;  %vm486_vm4 = vcmask 261120   ;;  %s818_s25 = sshll.u32 %s1347_s19, 7  ;;  %s212_s29 = scalar_lea.vmem [#allocation5], %s811_s9 }
  0x3a   : > { %1185 = vset.pattern.permute.xlu1 %v1295_v2  ;;  %1062 = vmatpush3.bf16.msra.mxu1 %v1296_v3  ;;  %v217_v7 = vand.u32 127, %v216_v6  ;;  %v214_v45 = vld [vmem:[%s1609_s2] sm:$0xff]  ;;  %s735_s30 = sshll.u32 %s212_s29, 4  ;;  %s1563_s13 = scalar_lea.hbm %s1611_s4, %s818_s25  ;;  %s1565_s30 = int_to_ptr.vmem [resolvable:$true] %s735_s30 }
  0x3b   : > { %1063 = vmatprep.subr.bf16.mxu1 %v1292_v0  ;;  %1186 = vset.pattern.permute.xlu0 %v1295_v2  ;;  %s722_s11 = scalar_lea.sflag [#allocation4], %s1431_s7  ;;  %s1223_s26 = scalar_lea.vmem %s1565_s30, 128 }
  0x3c   : > { %231 = vrot.lane.b32.xlu0 %v1451_v4, %s1297_s10  ;;  %239 = vperm.xlu1 %1185, %v1456_v5   ;;  %v218_v8 = vadd.s32 4294967295, %v217_v7  ;;  %v224_v9 = vadd.s32 1, %v217_v7  ;;  %p1224_p6 = scmp.ne.s32.totalorder %s1565_s30, %s1223_s26  ;;  %p1620_p11 = scmp.ne.s32.totalorder %s1615_s27, 0 }
  0x3d   : > { %s1300_s19 = smov [#allocation5]  }
  0x3e   : > { %1064 = vmatpush3.bf16.msra.mxu1 %v1296_v3  ;;  %vm219_vm1 = vcmp.ge.s32.totalorder %v218_v8, 0  ;;  %vm226_vm2 = vcmp.lt.s32.totalorder %v224_v9, 128  ;;  %p1225_p12 = pnand %p1224_p6, %p1620_p11  ;;  %s1227_s9 = sshll.u32 %s1300_s19, 4  ;;  %s1228_s9 = int_to_ptr.vmem [resolvable:$false] %s1227_s9 }
  0x3f   : > { %1065 = vmatprep.subr.bf16.mxu1 %v1292_v0  ;;  %v1478_v10 = vsel %vm219_vm1, 1.0, %v1294_v1  ;;  %v1482_v13 = vsel %vm226_vm2, 1.0, %v1294_v1  ;;  %s1229_s8 = scalar_lea.vmem %s1228_s9, 256  ;;  %p1230_p7 = scmp.lt.s32.totalorder %s1565_s30, %s1228_s9 }
  0x40   : > { %234 = vrot.lane.b32.xlu0 %v1451_v4, %s1298_s12  ;;  %p1226_p13 = pneg %p1225_p12  ;;  %p1231_p10 = scmp.lt.s32.totalorder %s1229_s8, %s1223_s26 }
  0x42   : > { %1066 = vmatpush3.bf16.msra.mxu1 %v1296_v3  ;;  %p1232_p2 = por %p1231_p10, %p1230_p7 }
  0x43   : > { %1067 = vmatprep.subr.bf16.mxu1 %v1292_v0 }
  0x44   : > { %p1233_p4 = pnand %p1232_p2, %p1226_p13 }
  0x46   : > { %1068 = vmatpush3.bf16.msra.mxu1 %v1296_v3 }
  0x47   : > { %1069 = vmatprep.subr.bf16.mxu1 %v1292_v0 }
  0x4a   : > { %1070 = vmatpush3.bf16.msra.mxu1 %v1296_v3 }
  0x4b   : > { %1071 = vmatprep.subr.bf16.mxu1 %v1292_v0 }
  0x4e   : > { %1072 = vmatpush3.bf16.msra.mxu1 %v1296_v3 }
  0x4f   : > { %1073 = vmatprep.subr.bf16.mxu1 %v1292_v0 }
  0x52   : > { %1074 = vmatpush3.bf16.msra.mxu1 %v1296_v3 }
  0x53   : > { %1075 = vmatprep.subr.bf16.mxu1 %v1292_v0 }
  0x56   : > { %1076 = vmatpush3.bf16.msra.mxu1 %v1296_v3 }
  0x57   : > { %1093 = vmatprep.subr.bf16.mxu1 %v1292_v0 }
  0xae   : > { %v232_v11 = vpop.permute.xlu0 %231 }
  0xaf   : > { %v233_v12 = vmul.f32 %v1478_v10, %v232_v11 }
  0xb1   : > { %v1059_v14 = vpack.c.bf16 %v1451_v4, %v233_v12 }
  0xb2   : > { %v235_v15 = vpop.permute.xlu0 %234 }
  0xb3   : > { %1060 = vmatpush3.bf16.msra.mxu0 %v1059_v14  ;;  %v236_v16 = vmul.f32 %v1482_v13, %v235_v15 }
  0xb4   : > { %902 = vmatprep.subr.mxu0 %v1294_v1 }
  0xb7   : > { %903 = vmatpush3.msra.mxu0 %v236_v16 }
  0xb8   : > { %905 = vmatmul.mubr.msk.f32.vlgmr.msra.gmra.mrb[0].mxu0 %vm242_vm3, %v213_v17  ;;  %1077 = vmatprep.subr.bf16.mxu0 %v1292_v0 }
  0xb9   : > { %1078 = vmatpush3.bf16.msra.mxu0 %v1296_v3  ;;  %974 = vmatprep.mubr.msk.f32.mxu0 %vm1293_vm0, %v1294_v1 }
  0xba   : > { %1079 = vmatprep.subr.bf16.mxu0 %v1292_v0 }
  0xbb   : > { %v240_v18 = vpop.permute.xlu1 %239 }
  0xbd   : > { %1080 = vmatpush3.bf16.msra.mxu0 %v1296_v3 }
  0xbe   : > { %1081 = vmatprep.subr.bf16.mxu0 %v1292_v0 }
  0xc1   : > { %1082 = vmatpush3.bf16.msra.mxu0 %v1296_v3 }
  0xc2   : > { %1083 = vmatprep.subr.bf16.mxu0 %v1292_v0 }
  0xc5   : > { %1084 = vmatpush3.bf16.msra.mxu0 %v1296_v3 }
  0xc6   : > { %1085 = vmatprep.subr.bf16.mxu0 %v1292_v0 }
  0xc9   : > { %1086 = vmatpush3.bf16.msra.mxu0 %v1296_v3 }
  0xca   : > { %1087 = vmatprep.subr.bf16.mxu0 %v1292_v0 }
  0xcd   : > { %1088 = vmatpush3.bf16.msra.mxu0 %v1296_v3 }
  0xce   : > { %1089 = vmatprep.subr.bf16.mxu0 %v1292_v0 }
  0xd1   : > { %1090 = vmatpush3.bf16.msra.mxu0 %v1296_v3 }
  0xd2   : > { %1091 = vmatprep.subr.bf16.mxu0 %v1292_v0 }
  0xd5   : > { %1092 = vmatpush3.bf16.msra.mxu0 %v1296_v3 }
  0xd6   : > { %1099 = vmatprep.subr.bf16.mxu0 %v1292_v0 }
 0x18b   : > { %v312_v19 = vpop.f32.mrb[0].mxu0 }
 0x18c   : > { %v313_v20 = vadd.f32 %v312_v19, %v240_v18  ;;  %v906_v21 = vpop.f32.mrb[1].mxu0 }
 0x18e   : > { %v386_v22 = vmul.f32 %v313_v20, %v313_v20  ;;  %940 = vmatmul.mubr.f32.vlgmr.msra.gmra.mrb[0].mxu1 %v313_v20 }
 0x18f   : > { %985 = vmatprep.mubr.msk.f32.mxu1 %vm1293_vm0, %v1294_v1 }
 0x190   : > { %975 = vmatmul.mubr.f32.vlgmr.msra.gmra.mrb[2].mxu0 %v386_v22 }
 0x191   : > { %1100 = vmatpush3.bf16.msra.mxu0 %v1296_v3  ;;  %1020 = vmatprep.mubr.msk.f32.mxu0 %vm1293_vm0, %v1294_v1 }
 0x192   : > { %1101 = vmatprep.subr.bf16.mxu0 %v1292_v0 }
 0x195   : > { %1102 = vmatpush3.bf16.msra.mxu0 %v1296_v3 }
 0x196   : > { %1103 = vmatprep.subr.bf16.mxu0 %v1292_v0 }
 0x199   : > { %1104 = vmatpush3.bf16.msra.mxu0 %v1296_v3 }
 0x19a   : > { %1105 = vmatprep.subr.bf16.mxu0 %v1292_v0 }
 0x19d   : > { %1106 = vmatpush3.bf16.msra.mxu0 %v1296_v3 }
 0x19e   : > { %1107 = vmatprep.subr.bf16.mxu0 %v1292_v0 }
 0x1a1   : > { %1108 = vmatpush3.bf16.msra.mxu0 %v1296_v3 }
 0x1a2   : > { %1109 = vmatprep.subr.bf16.mxu0 %v1292_v0 }
 0x1a5   : > { %1110 = vmatpush3.bf16.msra.mxu0 %v1296_v3 }
 0x1a6   : > { %1111 = vmatprep.subr.bf16.mxu0 %v1292_v0 }
 0x1a9   : > { %1112 = vmatpush3.bf16.msra.mxu0 %v1296_v3 }
 0x1aa   : > { %1113 = vmatprep.subr.bf16.mxu0 %v1292_v0 }
 0x1ad   : > { %1114 = vmatpush3.bf16.msra.mxu0 %v1296_v3 }
 0x261   : > { %v382_v23 = vpop.f32.mrb[0].mxu1 }
 0x262   : > { %v457_v24 = vmul.f32 0.0078125, %v382_v23  ;;  %v941_v25 = vpop.f32.mrb[1].mxu1 }
 0x263   : > { %v453_v26 = vpop.f32.mrb[2].mxu0 }
 0x264   : > { %v459_v27 = vmul.f32 %v457_v24, %v457_v24  ;;  %v458_v28 = vmul.f32 0.0078125, %v453_v26  ;;  %463 = vperm.xlu1 %1185, %v457_v24   ;;  %v976_v29 = vpop.f32.mrb[3].mxu0 }
 0x266   : > { %v460_v30 = vsub.f32 %v458_v28, %v459_v27 }
 0x268   : > { %v467_v31 = vadd.f32 1e-05, %v460_v30 }
 0x26a   : > { %1189 = vrsqrt.f32 %v467_v31 }
 0x274   : > { %v1190_v32 = vpop.eup %1189 }
 0x275   : > { %471 = vperm.xlu0 %1186, %v1190_v32  }
 0x279   : > { %1187 = vset.pattern.permute.xlu0 %v1299_v38 }
 0x27a   : > { %483 = vperm.xlu0 %1187, %v1456_v5  }
 0x27e   : > { %1188 = vset.pattern.permute.xlu0 %v1295_v2 }
 0x2e3   : > { %v464_v33 = vpop.permute.xlu1 %463 }
 0x2e4   : > { %v466_v34 = vsub.f32 %v313_v20, %v464_v33 }
 0x2f4   : > { %v472_v35 = vpop.permute.xlu0 %471 }
 0x2f5   : > { %v474_v36 = vmul.f32 %v472_v35, %v466_v34 }
 0x2f7   : > { %v475_v37 = vmax.f32 %v474_v36, 0.0 }
 0x2f9   : > { %476 = vrot.lane.b32.xlu1 %v475_v37, %s1297_s10  ;;  %v484_v46 = vpop.permute.xlu0 %483 }
 0x2fd   : > { %479 = vrot.lane.b32.xlu1 %v475_v37, %s1298_s12 }
 0x36b   : > { %v477_v39 = vpop.permute.xlu1 %476 }
 0x36c   : > { %v478_v40 = vmul.f32 %v1478_v10, %v477_v39 }
 0x36e   : > { %v1094_v41 = vpack.c.bf16 %v475_v37, %v478_v40 }
 0x36f   : > { %v480_v42 = vpop.permute.xlu1 %479 }
 0x370   : > { %v481_v43 = vmul.f32 %v1482_v13, %v480_v42  ;;  %1095 = vmatpush3.bf16.msra.mxu1 %v1094_v41 }
 0x371   : > { %1096 = vmatprep.subr.bf16.mxu1 %v1292_v0 }
 0x372   : > { %v1097_v44 = vpack.c.bf16 %v1451_v4, %v481_v43 }
 0x374   : > { %1098 = vmatpush3.bf16.msra.mxu1 %v1097_v44 }
 0x375   : > { %1115 = vmatprep.subr.bf16.mxu1 %v1292_v0 }
 0x377   : > { %986 = vmatmul.mubr.msk.f32.vlgmr.msra.gmra.mrb[2].mxu1 %vm486_vm4, %v214_v45 }
 0x378   : > { %1116 = vmatpush3.bf16.msra.mxu1 %v1296_v3  ;;  %1055 = vmatprep.mubr.msk.f32.mxu1 %vm1293_vm0, %v1294_v1 }
 0x379   : > { %1117 = vmatprep.subr.bf16.mxu1 %v1292_v0 }
 0x37c   : > { %1118 = vmatpush3.bf16.msra.mxu1 %v1296_v3 }
 0x37d   : > { %1119 = vmatprep.subr.bf16.mxu1 %v1292_v0 }
 0x380   : > { %1120 = vmatpush3.bf16.msra.mxu1 %v1296_v3 }
 0x381   : > { %1121 = vmatprep.subr.bf16.mxu1 %v1292_v0 }
 0x384   : > { %1122 = vmatpush3.bf16.msra.mxu1 %v1296_v3 }
 0x385   : > { %1123 = vmatprep.subr.bf16.mxu1 %v1292_v0 }
 0x388   : > { %1124 = vmatpush3.bf16.msra.mxu1 %v1296_v3 }
 0x389   : > { %1125 = vmatprep.subr.bf16.mxu1 %v1292_v0 }
 0x38c   : > { %1126 = vmatpush3.bf16.msra.mxu1 %v1296_v3 }
 0x38d   : > { %1127 = vmatprep.subr.bf16.mxu1 %v1292_v0 }
 0x390   : > { %1128 = vmatpush3.bf16.msra.mxu1 %v1296_v3 }
 0x391   : > { %1129 = vmatprep.subr.bf16.mxu1 %v1292_v0 }
 0x394   : > { %1130 = vmatpush3.bf16.msra.mxu1 %v1296_v3 }
 0x44a   : > { %v556_v47 = vpop.f32.mrb[2].mxu1 }
 0x44b   : > { %v557_v48 = vadd.f32 %v556_v47, %v484_v46  ;;  %v987_v49 = vpop.f32.mrb[3].mxu1 }
 0x44d   : > { %v630_v50 = vmul.f32 %v557_v48, %v557_v48  ;;  %1021 = vmatmul.mubr.f32.vlgmr.msra.gmra.mrb[4].mxu0 %v557_v48 }
 0x44f   : > { %1056 = vmatmul.mubr.f32.vlgmr.msra.gmra.mrb[4].mxu1 %v630_v50 }
 0x520   : > { %v626_v51 = vpop.f32.mrb[4].mxu0 }
 0x521   : > { %v701_v52 = vmul.f32 0.0078125, %v626_v51  ;;  %v1022_v53 = vpop.f32.mrb[5].mxu0 }
 0x522   : > { %v697_v54 = vpop.f32.mrb[4].mxu1 }
 0x523   : > { %v703_v55 = vmul.f32 %v701_v52, %v701_v52  ;;  %v702_v56 = vmul.f32 0.0078125, %v697_v54  ;;  %v1057_v57 = vpop.f32.mrb[5].mxu1  ;;  %707 = vperm.xlu1 %1185, %v701_v52  }
 0x525   : > { %v704_v58 = vsub.f32 %v702_v56, %v703_v55 }
 0x527   : > { %v711_v59 = vadd.f32 1e-05, %v704_v58 }
 0x529   : > { %1191 = vrsqrt.f32 %v711_v59 }
 0x533   : > { %v1192_v60 = vpop.eup %1191 }
 0x534   : > { %715 = vperm.xlu1 %1185, %v1192_v60  }
 0x5a2   : > { %v708_v61 = vpop.permute.xlu1 %707 }
 0x5a3   : > { %v710_v62 = vsub.f32 %v557_v48, %v708_v61 }
 0x5b3   : > { %v716_v63 = vpop.permute.xlu1 %715 }
 0x5b4   : > { %v718_v0 = vmul.f32 %v716_v63, %v710_v62 }
 0x5b6   : > { %v719_v1 = vmax.f32 %v718_v0, 0.0 }
 0x5b8   : > { %720 = vst [vmem:[%s212_s29] sm:$0xff] %v719_v1 }
 0x5b9   : > { %1236 = shalt.err (!%p1233_p4)
}
 0x5ba   : > { %s1237_s7 = scalar_lea.hbm %s1563_s13, 128  ;;  %s1241_s14 = scalar_lea.hbm %s1611_s4, 256 }
 0x5bb   : > { %p1238_p5 = scmp.ne.s32.totalorder %s1563_s13, %s1237_s7  ;;  %p1242_p0 = scmp.lt.u32.totalorder %s1563_s13, %s1611_s4 }
 0x5bc   : > { %p1243_p1 = scmp.lt.u32.totalorder %s1241_s14, %s1237_s7  ;;  %p1245_p6 = scmp.lt.u32.totalorder %s1237_s7, %s1563_s13 }
 0x5bd   : > { %p1239_p8 = pnand %p1238_p5, %p1620_p11 }
 0x5be   : > { %p1244_p3 = por %p1243_p1, %p1242_p0 }
 0x5bf   : > { %p1240_p9 = pneg %p1239_p8 }
 0x5c0   : > { %p1246_p12 = por %p1245_p6, %p1244_p3 }
 0x5c2   : > { %p1247_p13 = pnand %p1246_p12, %p1240_p9 }
 0x5c4   : > { %1250 = shalt.err (!%p1247_p13)
}
 0x5c5   : > { %1133 = dma.vmem_to_hbm [thread:$0]  (%p1620_p11), %s1565_s30, 128, %s1563_s13, %s722_s11  }
 0x5c6 PF: > { %s747_s23 = sand.u32 1, %s1277_s15   ;;  %p1621_p7 = scmp.ne.s32.totalorder %s1616_s28, 0 }
 0x5c7   : > { %p1622_p10 = scmp.ge.s32.totalorder %s1289_s18, 2  ;;  %s748_s25 = scalar_lea.sflag [#allocation4], %s747_s23 }
 0x5c9   : > { %p1140_p2 = pnand %p1622_p10, %p1621_p7 }
 0x5cb   : > { %1272 = dma.done.wait (!%p1140_p2), %s748_s25, 128  }
 0x5cc   : > { %1274 = vsyncadd (!%p1140_p2), %s748_s25, 4294967168  ;;  %p17_p4 = scmp.ge.s32.totalorder %s1351_s21, 4   ;;  %s1623_s15 = smov %s1281_s16 }
 0x5cd   : > { %s1624_s16 = smov %s1285_s17  ;;  %s1625_s17 = smov %s1363_s24 }
 0x5ce   : > { %s1626_s18 = smov %s1351_s21  ;;  %19 = sbr.rel (!%p17_p4) target bundleno = 5 (0x5), region = 81 }
 0x5d5   :  { %753 = vsyncpa [#allocation3], 1 }
 0x5d6   :  { %755 = vsyncpa [#allocation3 + $0x1], 1 }
 0x5d7   :  { %756 = vsyncpa [#allocation4], 1 }
 0x5d8   :  { %758 = vsyncpa [#allocation4 + $0x1], 1 }

</bundles_post_ra>
